<compile_context>
chip_gen: v5e
topology: v5e:2x2
jax: 0.10.0
libtpu: 0.0.40
codegen_flags: <defaults>
</compile_context>

<pallas_src>
import functools

import jax
import jax.numpy as jnp
from jax.experimental import pallas as pl
from jax.experimental.pallas import tpu as pltpu


def _batchnorm(x, gamma, beta, eps):
    # Single-pass training-mode BatchNorm over the row axis of a (rows, C) slab:
    # biased var = E[x^2] - E[x]^2, matching torch.nn.BatchNorm1d in training.
    inv_r = jnp.float32(1.0 / x.shape[0])
    mean = jnp.sum(x, axis=0, keepdims=True) * inv_r
    meansq = jnp.sum(x * x, axis=0, keepdims=True) * inv_r
    var = meansq - mean * mean
    scale = gamma * jax.lax.rsqrt(var + eps)
    return x * scale + (beta - mean * scale)


def encoder_block_kernel(
    x_ref,
    wq_ref, bq_ref, wk_ref, bk_ref, wv_ref, bv_ref,   # folded qkv projections
    wo_ref, bo_ref,                                   # MHA out_proj
    wa_ref, ba_ref,                                   # attn1_to_fcn
    wf1_ref, bf1_ref, wf2_ref, bf2_ref,               # attn1_fcn Linear 1 / 2
    g1_ref, be1_ref, g2_ref, be2_ref,                 # norm1a / norm1b affine
    o_ref,
    *, seq_len, batch, n_heads, head_dim, eps,
):
    L, N, H, hd = seq_len, batch, n_heads, head_dim
    Dt = H * hd
    R = N * L
    inv_res = jnp.float32(1.0 / 1.414)   # literal 1.414 from the reference module

    x = x_ref[...].astype(jnp.float32)   # (R, De), rows are (batch, seq)-major
    xb = x.astype(jnp.bfloat16)

    # Fused input_to_qkv1 + MHA in_proj (folded weights; q pre-scaled by 1/sqrt(hd)).
    q = jnp.dot(xb, wq_ref[...], preferred_element_type=jnp.float32) + bq_ref[...]
    k = jnp.dot(xb, wk_ref[...], preferred_element_type=jnp.float32) + bk_ref[...]
    v = jnp.dot(xb, wv_ref[...], preferred_element_type=jnp.float32) + bv_ref[...]

    # Move heads to a leading batch axis: (H*N, L, hd) with b = h*N + n.
    # Only leading-dim reshapes + static lane slices + leading-axis concat.
    def to_heads(t):
        t = t.reshape(N, L, Dt)
        return jnp.concatenate(
            [t[:, :, h * hd:(h + 1) * hd] for h in range(H)], axis=0
        ).astype(jnp.bfloat16)

    qh = to_heads(q)
    kh = to_heads(k)
    vh = to_heads(v)

    # Batched attention over all (head, batch) pairs in two einsums.
    s = jnp.einsum("bld,bmd->blm", qh, kh, preferred_element_type=jnp.float32)
    s = s - jnp.max(s, axis=-1, keepdims=True)
    p = jnp.exp(s)
    denom = jnp.sum(p, axis=-1, keepdims=True)
    o = jnp.einsum("blm,bmd->bld", p.astype(jnp.bfloat16), vh,
                   preferred_element_type=jnp.float32)
    o = o * pl.reciprocal(denom, approx=True)          # normalize after PV

    # Back to (R, Dt): per-head batch-slices concatenated along the lane axis.
    attn = jnp.concatenate([o[h * N:(h + 1) * N] for h in range(H)], axis=-1)
    attn = attn.reshape(R, Dt)

    # MHA out-projection.
    attn = jnp.dot(attn.astype(jnp.bfloat16), wo_ref[...],
                   preferred_element_type=jnp.float32) + bo_ref[...]

    # attn1_to_fcn + fused scaled residual + norm1a.
    y1 = jnp.dot(attn.astype(jnp.bfloat16), wa_ref[...],
                 preferred_element_type=jnp.float32) + ba_ref[...]
    y1 = (y1 + x) * inv_res
    y1 = _batchnorm(y1, g1_ref[...], be1_ref[...], eps)

    # Feed-forward: Linear -> exact GELU -> Linear, scaled residual, norm1b.
    h1 = jnp.dot(y1.astype(jnp.bfloat16), wf1_ref[...],
                 preferred_element_type=jnp.float32) + bf1_ref[...]
    h1 = 0.5 * h1 * (1.0 + jax.lax.erf(h1 * jnp.float32(0.7071067811865476)))
    h2 = jnp.dot(h1.astype(jnp.bfloat16), wf2_ref[...],
                 preferred_element_type=jnp.float32) + bf2_ref[...]
    y2 = (h2 + y1) * inv_res
    y2 = _batchnorm(y2, g2_ref[...], be2_ref[...], eps)

    o_ref[...] = y2.astype(o_ref.dtype)


def _fold_params(params, *, transformer_dim, n_heads):
    """Fold input_to_qkv1 with the MHA in_proj; cast matmul weights to bf16."""
    (w_qkv, b_qkv, w_in, b_in, w_out, b_out, w_af, b_af,
     w_f1, b_f1, w_f2, b_f2, g1, be1, g2, be2) = params
    Dt = transformer_dim
    hd = Dt // n_heads
    f32 = jnp.float32

    def fold(lo, hi, scale=1.0):
        w = (w_qkv[:, lo:hi].astype(f32) @ w_in[:, lo:hi].astype(f32)) * scale
        b = (b_qkv[:, lo:hi].astype(f32) @ w_in[:, lo:hi].astype(f32)
             + b_in[:, lo:hi].astype(f32)) * scale
        return w.astype(jnp.bfloat16), b.astype(f32)

    q_scale = 1.0 / (hd ** 0.5)          # fold the attention scale into W_q, b_q
    wq, bq = fold(0, Dt, q_scale)
    wk, bk = fold(Dt, 2 * Dt)
    wv, bv = fold(2 * Dt, 3 * Dt)

    bf16 = lambda w: w.astype(jnp.bfloat16)
    return (wq, bq, wk, bk, wv, bv,
            bf16(w_out), b_out.astype(f32),
            bf16(w_af), b_af.astype(f32),
            bf16(w_f1), b_f1.astype(f32),
            bf16(w_f2), b_f2.astype(f32),
            g1.astype(f32), be1.astype(f32), g2.astype(f32), be2.astype(f32))


def transformer_encoder_block(x, params, *, n_heads, transformer_dim, eps=1e-5):
    L, N, De = x.shape
    Dt = transformer_dim
    hd = Dt // n_heads

    folded = _fold_params(params, transformer_dim=Dt, n_heads=n_heads)
    # Batch-major flatten so attention rows per sequence are contiguous and all
    # projections are single 2-D matmuls.
    xf = jnp.transpose(x, (1, 0, 2)).reshape(N * L, De)

    kernel = functools.partial(
        encoder_block_kernel,
        seq_len=L, batch=N, n_heads=n_heads, head_dim=hd, eps=eps)
    args = (xf,) + folded

    out = pl.pallas_call(
        kernel,
        out_shape=jax.ShapeDtypeStruct((N * L, De), x.dtype),
        in_specs=[pl.BlockSpec(memory_space=pltpu.MemorySpace.VMEM)] * len(args),
        out_specs=pl.BlockSpec(memory_space=pltpu.MemorySpace.VMEM),
    )(*args)

    return jnp.transpose(out.reshape(N, L, De), (1, 0, 2))


def init_params(key, trans_emb_dim, transformer_dim):
    De, Dt = trans_emb_dim, transformer_dim

    def lin(k, fan_in, fan_out):
        # deterministic synthetic init (PyTorch-style uniform bound); weights
        # stored pre-transposed as (in_features, out_features).
        bound = 1.0 / (fan_in ** 0.5)
        kw, kb = jax.random.split(k)
        w = jax.random.uniform(kw, (fan_in, fan_out), jnp.float32, -bound, bound)
        b = jax.random.uniform(kb, (1, fan_out), jnp.float32, -bound, bound)
        return w, b

    ks = jax.random.split(key, 6)
    w_qkv, b_qkv = lin(ks[0], De, 3 * Dt)     # input_to_qkv1
    w_in, b_in = lin(ks[1], Dt, 3 * Dt)       # MHA in_proj (packed q|k|v)
    w_out, b_out = lin(ks[2], Dt, Dt)         # MHA out_proj
    w_af, b_af = lin(ks[3], Dt, De)           # attn1_to_fcn
    w_f1, b_f1 = lin(ks[4], De, 4 * De)       # attn1_fcn Linear 1
    w_f2, b_f2 = lin(ks[5], 4 * De, De)       # attn1_fcn Linear 2
    g1 = jnp.ones((1, De), jnp.float32)
    be1 = jnp.zeros((1, De), jnp.float32)
    g2 = jnp.ones((1, De), jnp.float32)
    be2 = jnp.zeros((1, De), jnp.float32)
    return (w_qkv, b_qkv, w_in, b_in, w_out, b_out, w_af, b_af,
            w_f1, b_f1, w_f2, b_f2, g1, be1, g2, be2)


if __name__ == "__main__":
    trans_emb_dim = 32
    transformer_dim = 32
    n_heads = 4
    L, N = 8, 2                      # (seq, batch)

    key = jax.random.PRNGKey(0)
    kx, kp = jax.random.split(key)
    x = jax.random.normal(kx, (L, N, trans_emb_dim), jnp.float32)
    params = init_params(kp, trans_emb_dim, transformer_dim)

    out = transformer_encoder_block(
        x, params, n_heads=n_heads, transformer_dim=transformer_dim)
    out = jax.block_until_ready(out)

    assert out.shape == (L, N, trans_emb_dim)
    assert bool(jnp.all(jnp.isfinite(out)))
    print("KERNEL_OK")
</pallas_src>

<mosaic_0001>
module attributes {stable_mosaic.version = 11 : i64} {
  func.func @encoder_block_kernel(%arg0: memref<16x32xf32, #tpu.memory_space<vmem>>, %arg1: memref<32x32xbf16, #tpu.memory_space<vmem>>, %arg2: memref<1x32xf32, #tpu.memory_space<vmem>>, %arg3: memref<32x32xbf16, #tpu.memory_space<vmem>>, %arg4: memref<1x32xf32, #tpu.memory_space<vmem>>, %arg5: memref<32x32xbf16, #tpu.memory_space<vmem>>, %arg6: memref<1x32xf32, #tpu.memory_space<vmem>>, %arg7: memref<32x32xbf16, #tpu.memory_space<vmem>>, %arg8: memref<1x32xf32, #tpu.memory_space<vmem>>, %arg9: memref<32x32xbf16, #tpu.memory_space<vmem>>, %arg10: memref<1x32xf32, #tpu.memory_space<vmem>>, %arg11: memref<32x128xbf16, #tpu.memory_space<vmem>>, %arg12: memref<1x128xf32, #tpu.memory_space<vmem>>, %arg13: memref<128x32xbf16, #tpu.memory_space<vmem>>, %arg14: memref<1x32xf32, #tpu.memory_space<vmem>>, %arg15: memref<1x32xf32, #tpu.memory_space<vmem>>, %arg16: memref<1x32xf32, #tpu.memory_space<vmem>>, %arg17: memref<1x32xf32, #tpu.memory_space<vmem>>, %arg18: memref<1x32xf32, #tpu.memory_space<vmem>>, %arg19: memref<16x32xf32, #tpu.memory_space<vmem>>) attributes {dimension_semantics = [], scalar_prefetch = 0 : i64, scratch_operands = 0 : i64, tpu.core_type = #tpu.core_type<tc>} {
    %c0 = arith.constant 0 : index
    %c0_0 = arith.constant 0 : index
    %0 = vector.load %arg0[%c0, %c0_0] : memref<16x32xf32, #tpu.memory_space<vmem>>, vector<16x32xf32>
    %1 = arith.truncf %0 : vector<16x32xf32> to vector<16x32xbf16>
    %c0_1 = arith.constant 0 : index
    %c0_2 = arith.constant 0 : index
    %2 = vector.load %arg1[%c0_1, %c0_2] : memref<32x32xbf16, #tpu.memory_space<vmem>>, vector<32x32xbf16>
    %cst = arith.constant dense<0.000000e+00> : vector<16x32xf32>
    %3 = tpu.matmul %1, %2, %cst {dimension_numbers = #tpu.dot_dimension_numbers<[1], [0], [0], [1], [0, 0, 1, 1], [], []>} : vector<16x32xbf16>, vector<32x32xbf16>, vector<16x32xf32> -> vector<16x32xf32>
    %c0_3 = arith.constant 0 : index
    %c0_4 = arith.constant 0 : index
    %4 = vector.load %arg2[%c0_3, %c0_4] : memref<1x32xf32, #tpu.memory_space<vmem>>, vector<1x32xf32>
    %5 = vector.broadcast %4 : vector<1x32xf32> to vector<16x32xf32>
    %6 = arith.addf %3, %5 : vector<16x32xf32>
    %c0_5 = arith.constant 0 : index
    %c0_6 = arith.constant 0 : index
    %7 = vector.load %arg3[%c0_5, %c0_6] : memref<32x32xbf16, #tpu.memory_space<vmem>>, vector<32x32xbf16>
    %cst_7 = arith.constant dense<0.000000e+00> : vector<16x32xf32>
    %8 = tpu.matmul %1, %7, %cst_7 {dimension_numbers = #tpu.dot_dimension_numbers<[1], [0], [0], [1], [0, 0, 1, 1], [], []>} : vector<16x32xbf16>, vector<32x32xbf16>, vector<16x32xf32> -> vector<16x32xf32>
    %c0_8 = arith.constant 0 : index
    %c0_9 = arith.constant 0 : index
    %9 = vector.load %arg4[%c0_8, %c0_9] : memref<1x32xf32, #tpu.memory_space<vmem>>, vector<1x32xf32>
    %10 = vector.broadcast %9 : vector<1x32xf32> to vector<16x32xf32>
    %11 = arith.addf %8, %10 : vector<16x32xf32>
    %c0_10 = arith.constant 0 : index
    %c0_11 = arith.constant 0 : index
    %12 = vector.load %arg5[%c0_10, %c0_11] : memref<32x32xbf16, #tpu.memory_space<vmem>>, vector<32x32xbf16>
    %cst_12 = arith.constant dense<0.000000e+00> : vector<16x32xf32>
    %13 = tpu.matmul %1, %12, %cst_12 {dimension_numbers = #tpu.dot_dimension_numbers<[1], [0], [0], [1], [0, 0, 1, 1], [], []>} : vector<16x32xbf16>, vector<32x32xbf16>, vector<16x32xf32> -> vector<16x32xf32>
    %c0_13 = arith.constant 0 : index
    %c0_14 = arith.constant 0 : index
    %14 = vector.load %arg6[%c0_13, %c0_14] : memref<1x32xf32, #tpu.memory_space<vmem>>, vector<1x32xf32>
    %15 = vector.broadcast %14 : vector<1x32xf32> to vector<16x32xf32>
    %16 = arith.addf %13, %15 : vector<16x32xf32>
    %17 = vector.shape_cast %6 : vector<16x32xf32> to vector<2x8x32xf32>
    %18 = vector.extract_strided_slice %17 {offsets = [0, 0, 0], sizes = [2, 8, 8], strides = [1, 1, 1]} : vector<2x8x32xf32> to vector<2x8x8xf32>
    %19 = vector.extract_strided_slice %17 {offsets = [0, 0, 8], sizes = [2, 8, 8], strides = [1, 1, 1]} : vector<2x8x32xf32> to vector<2x8x8xf32>
    %20 = vector.extract_strided_slice %17 {offsets = [0, 0, 16], sizes = [2, 8, 8], strides = [1, 1, 1]} : vector<2x8x32xf32> to vector<2x8x8xf32>
    %21 = vector.extract_strided_slice %17 {offsets = [0, 0, 24], sizes = [2, 8, 8], strides = [1, 1, 1]} : vector<2x8x32xf32> to vector<2x8x8xf32>
    %22 = tpu.concatenate %18, %19, %20, %21 in 0 : vector<2x8x8xf32>, vector<2x8x8xf32>, vector<2x8x8xf32>, vector<2x8x8xf32> -> vector<8x8x8xf32>
    %23 = arith.truncf %22 : vector<8x8x8xf32> to vector<8x8x8xbf16>
    %24 = vector.shape_cast %11 : vector<16x32xf32> to vector<2x8x32xf32>
    %25 = vector.extract_strided_slice %24 {offsets = [0, 0, 0], sizes = [2, 8, 8], strides = [1, 1, 1]} : vector<2x8x32xf32> to vector<2x8x8xf32>
    %26 = vector.extract_strided_slice %24 {offsets = [0, 0, 8], sizes = [2, 8, 8], strides = [1, 1, 1]} : vector<2x8x32xf32> to vector<2x8x8xf32>
    %27 = vector.extract_strided_slice %24 {offsets = [0, 0, 16], sizes = [2, 8, 8], strides = [1, 1, 1]} : vector<2x8x32xf32> to vector<2x8x8xf32>
    %28 = vector.extract_strided_slice %24 {offsets = [0, 0, 24], sizes = [2, 8, 8], strides = [1, 1, 1]} : vector<2x8x32xf32> to vector<2x8x8xf32>
    %29 = tpu.concatenate %25, %26, %27, %28 in 0 : vector<2x8x8xf32>, vector<2x8x8xf32>, vector<2x8x8xf32>, vector<2x8x8xf32> -> vector<8x8x8xf32>
    %30 = arith.truncf %29 : vector<8x8x8xf32> to vector<8x8x8xbf16>
    %31 = vector.shape_cast %16 : vector<16x32xf32> to vector<2x8x32xf32>
    %32 = vector.extract_strided_slice %31 {offsets = [0, 0, 0], sizes = [2, 8, 8], strides = [1, 1, 1]} : vector<2x8x32xf32> to vector<2x8x8xf32>
    %33 = vector.extract_strided_slice %31 {offsets = [0, 0, 8], sizes = [2, 8, 8], strides = [1, 1, 1]} : vector<2x8x32xf32> to vector<2x8x8xf32>
    %34 = vector.extract_strided_slice %31 {offsets = [0, 0, 16], sizes = [2, 8, 8], strides = [1, 1, 1]} : vector<2x8x32xf32> to vector<2x8x8xf32>
    %35 = vector.extract_strided_slice %31 {offsets = [0, 0, 24], sizes = [2, 8, 8], strides = [1, 1, 1]} : vector<2x8x32xf32> to vector<2x8x8xf32>
    %36 = tpu.concatenate %32, %33, %34, %35 in 0 : vector<2x8x8xf32>, vector<2x8x8xf32>, vector<2x8x8xf32>, vector<2x8x8xf32> -> vector<8x8x8xf32>
    %37 = arith.truncf %36 : vector<8x8x8xf32> to vector<8x8x8xbf16>
    "tpu.trace_start"() <{level = 10 : i32, message = "bld,bmd->blm"}> : () -> ()
    %cst_15 = arith.constant dense<0.000000e+00> : vector<8x8x8xf32>
    %38 = tpu.matmul %23, %30, %cst_15 {dimension_numbers = #tpu.dot_dimension_numbers<[2], [2], [1], [1], [0, 0, 0, 1, 1, 1], [0], [0]>} : vector<8x8x8xbf16>, vector<8x8x8xbf16>, vector<8x8x8xf32> -> vector<8x8x8xf32>
    "tpu.trace_stop"() : () -> ()
    %cst_16 = arith.constant dense<0xFF800000> : vector<8x8xf32>
    %39 = vector.multi_reduction <maximumf>, %38, %cst_16 [2] : vector<8x8x8xf32> to vector<8x8xf32>
    %40 = vector.shape_cast %39 : vector<8x8xf32> to vector<8x8x1xf32>
    %41 = vector.broadcast %40 : vector<8x8x1xf32> to vector<8x8x8xf32>
    %42 = arith.subf %38, %41 : vector<8x8x8xf32>
    %43 = math.exp %42 : vector<8x8x8xf32>
    %cst_17 = arith.constant dense<0.000000e+00> : vector<8x8xf32>
    %44 = vector.multi_reduction <add>, %43, %cst_17 [2] : vector<8x8x8xf32> to vector<8x8xf32>
    %45 = vector.shape_cast %44 : vector<8x8xf32> to vector<8x8x1xf32>
    %46 = arith.truncf %43 : vector<8x8x8xf32> to vector<8x8x8xbf16>
    "tpu.trace_start"() <{level = 10 : i32, message = "blm,bmd->bld"}> : () -> ()
    %cst_18 = arith.constant dense<0.000000e+00> : vector<8x8x8xf32>
    %47 = tpu.matmul %46, %37, %cst_18 {dimension_numbers = #tpu.dot_dimension_numbers<[2], [1], [1], [2], [0, 0, 0, 1, 1, 2], [0], [0]>} : vector<8x8x8xbf16>, vector<8x8x8xbf16>, vector<8x8x8xf32> -> vector<8x8x8xf32>
    "tpu.trace_stop"() : () -> ()
    %48 = tpu.reciprocal %45 {approx = true} : vector<8x8x1xf32> -> vector<8x8x1xf32>
    %49 = vector.broadcast %48 : vector<8x8x1xf32> to vector<8x8x8xf32>
    %50 = arith.mulf %47, %49 : vector<8x8x8xf32>
    %51 = vector.extract_strided_slice %50 {offsets = [0, 0, 0], sizes = [2, 8, 8], strides = [1, 1, 1]} : vector<8x8x8xf32> to vector<2x8x8xf32>
    %52 = vector.extract_strided_slice %50 {offsets = [2, 0, 0], sizes = [2, 8, 8], strides = [1, 1, 1]} : vector<8x8x8xf32> to vector<2x8x8xf32>
    %53 = vector.extract_strided_slice %50 {offsets = [4, 0, 0], sizes = [2, 8, 8], strides = [1, 1, 1]} : vector<8x8x8xf32> to vector<2x8x8xf32>
    %54 = vector.extract_strided_slice %50 {offsets = [6, 0, 0], sizes = [2, 8, 8], strides = [1, 1, 1]} : vector<8x8x8xf32> to vector<2x8x8xf32>
    %55 = tpu.concatenate %51, %52, %53, %54 in 2 : vector<2x8x8xf32>, vector<2x8x8xf32>, vector<2x8x8xf32>, vector<2x8x8xf32> -> vector<2x8x32xf32>
    %56 = vector.shape_cast %55 : vector<2x8x32xf32> to vector<16x32xf32>
    %57 = arith.truncf %56 : vector<16x32xf32> to vector<16x32xbf16>
    %c0_19 = arith.constant 0 : index
    %c0_20 = arith.constant 0 : index
    %58 = vector.load %arg7[%c0_19, %c0_20] : memref<32x32xbf16, #tpu.memory_space<vmem>>, vector<32x32xbf16>
    %cst_21 = arith.constant dense<0.000000e+00> : vector<16x32xf32>
    %59 = tpu.matmul %57, %58, %cst_21 {dimension_numbers = #tpu.dot_dimension_numbers<[1], [0], [0], [1], [0, 0, 1, 1], [], []>} : vector<16x32xbf16>, vector<32x32xbf16>, vector<16x32xf32> -> vector<16x32xf32>
    %c0_22 = arith.constant 0 : index
    %c0_23 = arith.constant 0 : index
    %60 = vector.load %arg8[%c0_22, %c0_23] : memref<1x32xf32, #tpu.memory_space<vmem>>, vector<1x32xf32>
    %61 = vector.broadcast %60 : vector<1x32xf32> to vector<16x32xf32>
    %62 = arith.addf %59, %61 : vector<16x32xf32>
    %63 = arith.truncf %62 : vector<16x32xf32> to vector<16x32xbf16>
    %c0_24 = arith.constant 0 : index
    %c0_25 = arith.constant 0 : index
    %64 = vector.load %arg9[%c0_24, %c0_25] : memref<32x32xbf16, #tpu.memory_space<vmem>>, vector<32x32xbf16>
    %cst_26 = arith.constant dense<0.000000e+00> : vector<16x32xf32>
    %65 = tpu.matmul %63, %64, %cst_26 {dimension_numbers = #tpu.dot_dimension_numbers<[1], [0], [0], [1], [0, 0, 1, 1], [], []>} : vector<16x32xbf16>, vector<32x32xbf16>, vector<16x32xf32> -> vector<16x32xf32>
    %c0_27 = arith.constant 0 : index
    %c0_28 = arith.constant 0 : index
    %66 = vector.load %arg10[%c0_27, %c0_28] : memref<1x32xf32, #tpu.memory_space<vmem>>, vector<1x32xf32>
    %67 = vector.broadcast %66 : vector<1x32xf32> to vector<16x32xf32>
    %68 = arith.addf %65, %67 : vector<16x32xf32>
    %69 = arith.addf %68, %0 : vector<16x32xf32>
    %cst_29 = arith.constant 0.70721358 : f32
    %70 = vector.broadcast %cst_29 : f32 to vector<16x32xf32>
    %71 = arith.mulf %69, %70 : vector<16x32xf32>
    %c0_30 = arith.constant 0 : index
    %c0_31 = arith.constant 0 : index
    %72 = vector.load %arg15[%c0_30, %c0_31] : memref<1x32xf32, #tpu.memory_space<vmem>>, vector<1x32xf32>
    %c0_32 = arith.constant 0 : index
    %c0_33 = arith.constant 0 : index
    %73 = vector.load %arg16[%c0_32, %c0_33] : memref<1x32xf32, #tpu.memory_space<vmem>>, vector<1x32xf32>
    %cst_34 = arith.constant dense<0.000000e+00> : vector<32xf32>
    %74 = vector.multi_reduction <add>, %71, %cst_34 [0] : vector<16x32xf32> to vector<32xf32>
    %75 = vector.shape_cast %74 : vector<32xf32> to vector<1x32xf32>
    %cst_35 = arith.constant 6.250000e-02 : f32
    %76 = vector.broadcast %cst_35 : f32 to vector<1x32xf32>
    %77 = arith.mulf %75, %76 : vector<1x32xf32>
    %78 = arith.mulf %71, %71 : vector<16x32xf32>
    %cst_36 = arith.constant dense<0.000000e+00> : vector<32xf32>
    %79 = vector.multi_reduction <add>, %78, %cst_36 [0] : vector<16x32xf32> to vector<32xf32>
    %80 = vector.shape_cast %79 : vector<32xf32> to vector<1x32xf32>
    %cst_37 = arith.constant 6.250000e-02 : f32
    %81 = vector.broadcast %cst_37 : f32 to vector<1x32xf32>
    %82 = arith.mulf %80, %81 : vector<1x32xf32>
    %83 = arith.mulf %77, %77 : vector<1x32xf32>
    %84 = arith.subf %82, %83 : vector<1x32xf32>
    %cst_38 = arith.constant 9.99999974E-6 : f32
    %85 = vector.broadcast %cst_38 : f32 to vector<1x32xf32>
    %86 = arith.addf %84, %85 : vector<1x32xf32>
    %87 = math.rsqrt %86 : vector<1x32xf32>
    %88 = arith.mulf %72, %87 : vector<1x32xf32>
    %89 = vector.broadcast %88 : vector<1x32xf32> to vector<16x32xf32>
    %90 = arith.mulf %71, %89 : vector<16x32xf32>
    %91 = arith.mulf %77, %88 : vector<1x32xf32>
    %92 = arith.subf %73, %91 : vector<1x32xf32>
    %93 = vector.broadcast %92 : vector<1x32xf32> to vector<16x32xf32>
    %94 = arith.addf %90, %93 : vector<16x32xf32>
    %95 = arith.truncf %94 : vector<16x32xf32> to vector<16x32xbf16>
    %c0_39 = arith.constant 0 : index
    %c0_40 = arith.constant 0 : index
    %96 = vector.load %arg11[%c0_39, %c0_40] : memref<32x128xbf16, #tpu.memory_space<vmem>>, vector<32x128xbf16>
    %cst_41 = arith.constant dense<0.000000e+00> : vector<16x128xf32>
    %97 = tpu.matmul %95, %96, %cst_41 {dimension_numbers = #tpu.dot_dimension_numbers<[1], [0], [0], [1], [0, 0, 1, 1], [], []>} : vector<16x32xbf16>, vector<32x128xbf16>, vector<16x128xf32> -> vector<16x128xf32>
    %c0_42 = arith.constant 0 : index
    %c0_43 = arith.constant 0 : index
    %98 = vector.load %arg12[%c0_42, %c0_43] : memref<1x128xf32, #tpu.memory_space<vmem>>, vector<1x128xf32>
    %99 = vector.broadcast %98 : vector<1x128xf32> to vector<16x128xf32>
    %100 = arith.addf %97, %99 : vector<16x128xf32>
    %cst_44 = arith.constant 5.000000e-01 : f32
    %101 = vector.broadcast %cst_44 : f32 to vector<16x128xf32>
    %102 = arith.mulf %101, %100 : vector<16x128xf32>
    %cst_45 = arith.constant 0.707106769 : f32
    %103 = vector.broadcast %cst_45 : f32 to vector<16x128xf32>
    %104 = arith.mulf %100, %103 : vector<16x128xf32>
    %105 = math.erf %104 : vector<16x128xf32>
    %cst_46 = arith.constant 1.000000e+00 : f32
    %106 = vector.broadcast %cst_46 : f32 to vector<16x128xf32>
    %107 = arith.addf %106, %105 : vector<16x128xf32>
    %108 = arith.mulf %102, %107 : vector<16x128xf32>
    %109 = arith.truncf %108 : vector<16x128xf32> to vector<16x128xbf16>
    %c0_47 = arith.constant 0 : index
    %c0_48 = arith.constant 0 : index
    %110 = vector.load %arg13[%c0_47, %c0_48] : memref<128x32xbf16, #tpu.memory_space<vmem>>, vector<128x32xbf16>
    %cst_49 = arith.constant dense<0.000000e+00> : vector<16x32xf32>
    %111 = tpu.matmul %109, %110, %cst_49 {dimension_numbers = #tpu.dot_dimension_numbers<[1], [0], [0], [1], [0, 0, 1, 1], [], []>} : vector<16x128xbf16>, vector<128x32xbf16>, vector<16x32xf32> -> vector<16x32xf32>
    %c0_50 = arith.constant 0 : index
    %c0_51 = arith.constant 0 : index
    %112 = vector.load %arg14[%c0_50, %c0_51] : memref<1x32xf32, #tpu.memory_space<vmem>>, vector<1x32xf32>
    %113 = vector.broadcast %112 : vector<1x32xf32> to vector<16x32xf32>
    %114 = arith.addf %111, %113 : vector<16x32xf32>
    %115 = arith.addf %114, %94 : vector<16x32xf32>
    %cst_52 = arith.constant 0.70721358 : f32
    %116 = vector.broadcast %cst_52 : f32 to vector<16x32xf32>
    %117 = arith.mulf %115, %116 : vector<16x32xf32>
    %c0_53 = arith.constant 0 : index
    %c0_54 = arith.constant 0 : index
    %118 = vector.load %arg17[%c0_53, %c0_54] : memref<1x32xf32, #tpu.memory_space<vmem>>, vector<1x32xf32>
    %c0_55 = arith.constant 0 : index
    %c0_56 = arith.constant 0 : index
    %119 = vector.load %arg18[%c0_55, %c0_56] : memref<1x32xf32, #tpu.memory_space<vmem>>, vector<1x32xf32>
    %cst_57 = arith.constant dense<0.000000e+00> : vector<32xf32>
    %120 = vector.multi_reduction <add>, %117, %cst_57 [0] : vector<16x32xf32> to vector<32xf32>
    %121 = vector.shape_cast %120 : vector<32xf32> to vector<1x32xf32>
    %cst_58 = arith.constant 6.250000e-02 : f32
    %122 = vector.broadcast %cst_58 : f32 to vector<1x32xf32>
    %123 = arith.mulf %121, %122 : vector<1x32xf32>
    %124 = arith.mulf %117, %117 : vector<16x32xf32>
    %cst_59 = arith.constant dense<0.000000e+00> : vector<32xf32>
    %125 = vector.multi_reduction <add>, %124, %cst_59 [0] : vector<16x32xf32> to vector<32xf32>
    %126 = vector.shape_cast %125 : vector<32xf32> to vector<1x32xf32>
    %cst_60 = arith.constant 6.250000e-02 : f32
    %127 = vector.broadcast %cst_60 : f32 to vector<1x32xf32>
    %128 = arith.mulf %126, %127 : vector<1x32xf32>
    %129 = arith.mulf %123, %123 : vector<1x32xf32>
    %130 = arith.subf %128, %129 : vector<1x32xf32>
    %cst_61 = arith.constant 9.99999974E-6 : f32
    %131 = vector.broadcast %cst_61 : f32 to vector<1x32xf32>
    %132 = arith.addf %130, %131 : vector<1x32xf32>
    %133 = math.rsqrt %132 : vector<1x32xf32>
    %134 = arith.mulf %118, %133 : vector<1x32xf32>
    %135 = vector.broadcast %134 : vector<1x32xf32> to vector<16x32xf32>
    %136 = arith.mulf %117, %135 : vector<16x32xf32>
    %137 = arith.mulf %123, %134 : vector<1x32xf32>
    %138 = arith.subf %119, %137 : vector<1x32xf32>
    %139 = vector.broadcast %138 : vector<1x32xf32> to vector<16x32xf32>
    %140 = arith.addf %136, %139 : vector<16x32xf32>
    %c0_62 = arith.constant 0 : index
    %c0_63 = arith.constant 0 : index
    %141 = vector.load %arg19[%c0_62, %c0_63] : memref<16x32xf32, #tpu.memory_space<vmem>>, vector<16x32xf32>
    tpu.vector_store %arg19[%c0_62, %c0_63], %140 {strides = array<i32>} : memref<16x32xf32, #tpu.memory_space<vmem>>, vector<16x32xf32>,
    return
  }
}

</mosaic_0001>

<bundles_post_ra>
// kernel: tpu_custom_call.1
= control target key start
LH: loop header
LB: loop body
LE: loop exit
PB: predicated region body
PF: predicated region fallthrough
CT: control target
= control target key end

     0   :  { %s1792_s0 = inlined_call_operand.vmem [shape: f32[16,32], index: 0, kind: input, shape index: {}]   ;;  %s1793_s1 = inlined_call_operand.vmem [shape: bf16[32,32], index: 1, kind: input, shape index: {}]   ;;  %s1794_s2 = inlined_call_operand.vmem [shape: f32[1,32], index: 2, kind: input, shape index: {}]   ;;  %s1795_s3 = inlined_call_operand.vmem [shape: bf16[32,32], index: 3, kind: input, shape index: {}]   ;;  %s1796_s4 = inlined_call_operand.vmem [shape: f32[1,32], index: 4, kind: input, shape index: {}]   ;;  %s1797_s5 = inlined_call_operand.vmem [shape: bf16[32,32], index: 5, kind: input, shape index: {}]   ;;  %s1798_s6 = inlined_call_operand.vmem [shape: f32[1,32], index: 6, kind: input, shape index: {}]   ;;  %s1799_s7 = inlined_call_operand.vmem [shape: bf16[32,32], index: 7, kind: input, shape index: {}]   ;;  %s1800_s8 = inlined_call_operand.vmem [shape: f32[1,32], index: 8, kind: input, shape index: {}]   ;;  %s1801_s9 = inlined_call_operand.hbm [shape: bf16[32,32], index: 9, kind: input, shape index: {}]   ;;  %s1802_s10 = inlined_call_operand.vmem [shape: f32[1,32], index: 10, kind: input, shape index: {}]   ;;  %s1803_s11 = inlined_call_operand.hbm [shape: bf16[32,128], index: 11, kind: input, shape index: {}]   ;;  %s1804_s12 = inlined_call_operand.vmem [shape: f32[1,128], index: 12, kind: input, shape index: {}]   ;;  %s1805_s13 = inlined_call_operand.vmem [shape: bf16[128,32], index: 13, kind: input, shape index: {}]   ;;  %s1806_s14 = inlined_call_operand.vmem [shape: f32[1,32], index: 14, kind: input, shape index: {}]   ;;  %s1807_s15 = inlined_call_operand.vmem [shape: f32[1,32], index: 15, kind: input, shape index: {}]   ;;  %s1808_s16 = inlined_call_operand.vmem [shape: f32[1,32], index: 16, kind: input, shape index: {}]   ;;  %s1809_s17 = inlined_call_operand.vmem [shape: f32[1,32], index: 17, kind: input, shape index: {}]   ;;  %s1810_s18 = inlined_call_operand.vmem [shape: f32[1,32], index: 18, kind: input, shape index: {}]   ;;  %s1811_s19 = inlined_call_operand.hbm [shape: f32[16,32], index: 19, kind: output, shape index: {}]  }
   0x1   :  { %1815 = sst [smem:[#allocation11_spill]] %s1792_s0 }
   0x2   :  { %1816 = sst [smem:[#allocation12_spill]] %s1793_s1 }
   0x3   :  { %1817 = sst [smem:[#allocation13_spill]] %s1794_s2 }
   0x4   :  { %1818 = sst [smem:[#allocation14_spill]] %s1795_s3 }
   0x5   :  { %24 = vsyncpa [#allocation3], 0 }
   0x6   :  { %25 = vsyncpa [#allocation6], 0 }
   0x7   :  { %26 = vsyncpa [#allocation4], 0  ;;  %s49_s20 = sshll.u32 %s1801_s9, 4  ;;  %s1429_s21 = smov [#allocation2]   ;;  %s50_s20 = int_to_ptr.hbm [resolvable:$true] %s49_s20 }
   0x8   :  { %s51_s1 = sshll.u32 %s1429_s21, 4  ;;  %s64_s23 = sshll.u32 %s1803_s11, 4  ;;  %s52_s1 = int_to_ptr.vmem [resolvable:$true] %s51_s1  ;;  %s65_s23 = int_to_ptr.hbm [resolvable:$true] %s64_s23 }
   0x9   :  { %s1430_s24 = smov 64   ;;  %s1431_s25 = smov 4  }
   0xa   :  { %57 = dma.hbm_to_vmem [thread:$0]  %s50_s20, 256, %s52_s1, [#allocation3], %s1430_s24, %s1430_s24, %s1431_s25  }
   0xb   :  { %s1432_s3 = smov [#allocation5]  }
   0xc   :  { %s66_s26 = sshll.u32 %s1432_s3, 4  ;;  %s67_s26 = int_to_ptr.vmem [resolvable:$true] %s66_s26 }
   0xd   :  { %72 = dma.hbm_to_vmem [thread:$0]  %s65_s23, 256, %s67_s26, [#allocation6], %s1430_s24, %s1430_s24, %s1431_s25  }
   0xe   :  { %1423 = dma.done.wait [#allocation3], 256  }
   0xf   :  { %1424 = vsyncadd [#allocation3], 4294967040 }
  0x10   :  { %1425 = dma.done.wait [#allocation6], 256  }
  0x11   :  { %1426 = vsyncadd [#allocation6], 4294967040  ;;  %s1819_s28 = sld [smem:[#allocation12_spill]]  ;;  %v1247_v6 = vld [vmem:[%s1797_s5 + $0x8] sm:$0xff]  ;;  %v1246_v7 = vld [vmem:[%s1797_s5] sm:$0xff]  ;;  %vm119_vm0 = vcmask 261120  }
  0x12   :  { %s1820_s30 = sld [smem:[#allocation14_spill]]  ;;  %197 = vmatpush.bf16.msra.mxu3 %v1247_v6  ;;  %v1305_v10 = vld [vmem:[%s1796_s4] ss:$0 sm:$0xff]  ;;  %vm289_vm1 = vcmask 64512   ;;  %s1433_s11 = smov 112   ;;  %vm525_vm2 = vcmask 1043456  }
  0x13   :  { %s1821_s23 = sld [smem:[#allocation11_spill]]  ;;  %s1434_s21 = smov 120   ;;  %v1306_v28 = vld [vmem:[%s1798_s6] ss:$0 sm:$0xff]  ;;  %vm717_vm3 = vcmask 130048   ;;  %vm720_vm4 = vcmask 195584  }
  0x14   :  { %s1822_s0 = sld [smem:[#allocation13_spill]]  ;;  %s1435_s4 = smov 104  }
  0x15   :  { %s1436_s6 = smov 8   ;;  %s1437_s22 = smov 16  }
  0x16   :  { %198 = vmatpush.bf16.msra.mxu3 %v1246_v7  ;;  %s1438_s2 = smov 24  }
  0x17   :  { %v1243_v0 = vld [vmem:[%s1819_s28 + $0x8] sm:$0xff]  ;;  %v1242_v2 = vld [vmem:[%s1819_s28] sm:$0xff] }
  0x18   :  { %v1245_v1 = vld [vmem:[%s1820_s30 + $0x8] sm:$0xff]  ;;  %v1244_v3 = vld [vmem:[%s1820_s30] sm:$0xff]  ;;  %129 = vmatpush.bf16.msra.mxu0 %v1243_v0 }
  0x19   :  { %v1562_v4 = vld [vmem:[%s1821_s23] sm:$0xff]  ;;  %163 = vmatpush.bf16.msra.mxu1 %v1245_v1  ;;  %v1567_v5 = vld [vmem:[%s1821_s23 + $0x8] sm:$0xff] }
  0x1a   :  { %v98_v8 = vpack.c.bf16 %v1567_v5, %v1562_v4  ;;  %v1304_v9 = vld [vmem:[%s1822_s0] ss:$0 sm:$0xff] }
  0x1c   :  { %130 = vmatpush.bf16.msra.mxu0 %v1242_v2  ;;  %1164 = vmatmul.msk.bf16.vlgmr.msra.gmra.mxu3 %vm119_vm0, %v98_v8 }
  0x1d   :  { %164 = vmatpush.bf16.msra.mxu1 %v1244_v3 }
  0x1f   :  { %1146 = vmatmul.msk.bf16.vlgmr.msra.gmra.mxu0 %vm119_vm0, %v98_v8 }
  0x20   :  { %1155 = vmatmul.msk.bf16.vlgmr.msra.gmra.mxu1 %vm119_vm0, %v98_v8 }
  0x9c   :  { %v132_v11 = vpop.f32.mrf.mxu0 }
  0x9d   :  { %v166_v12 = vpop.f32.mrf.mxu1  ;;  %v133_v13 = vadd.f32 %v1304_v9, %v132_v11 }
  0x9e   :  { %v167_v14 = vadd.f32 %v1305_v10, %v166_v12 }
  0x9f   :  { %207 = vrot.lane.b32.xlu2 %v133_v13, %s1434_s21  ;;  %v225_v21 = vpack.c.bf16 %v133_v13, %v133_v13  ;;  %v200_v27 = vpop.f32.mrf.mxu3 }
  0xa0   :  { %241 = vrot.lane.b32.xlu1 %v167_v14, %s1433_s11  ;;  %v253_v15 = vpack.c.bf16 %v167_v14, %v167_v14  ;;  %v1603_v30 = vadd.f32 %v1306_v28, %v200_v27 }
  0xa2   :  { %v294_v16 = vsel %vm289_vm1, %v253_v15, 0 }
  0xa3   :  { %303 = vmatpush.bf16.xpose.msrb.mxu3 %v294_v16 }
  0xa4   :  { %v134_v19 = vpop.f32.mrf.mxu0 }
  0xa5   :  { %v168_v17 = vpop.f32.mrf.mxu1  ;;  %v135_v23 = vadd.f32 %v1304_v9, %v134_v19  ;;  %v281_v9 = vpack.c.bf16 %v1603_v30, %v1603_v30 }
  0xa6   :  { %v169_v18 = vadd.f32 %v1305_v10, %v168_v17 }
  0xa7   :  { %v1274_v25 = vpack.i.bf16 %v167_v14, %v135_v23  ;;  %v226_v26 = vpack.c.bf16 %v135_v23, %v135_v23  ;;  %v202_v29 = vpop.f32.mrf.mxu3  ;;  %v527_v11 = vsel %vm525_vm2, %v281_v9, 0 }
  0xa8   :  { %237 = vrot.lane.b32.xlu0 %v169_v18, %s1434_s21  ;;  %249 = vrot.lane.b32.xlu1 %v169_v18, %s1435_s4  ;;  %v1279_v20 = vpack.i.bf16 %v169_v18, %v133_v13  ;;  %v254_v22 = vpack.c.bf16 %v169_v18, %v169_v18  ;;  %v1605_v31 = vadd.f32 %v1306_v28, %v202_v29 }
  0xaa   :  { %1280 = vrot.lane.b32.xlu2 %v1279_v20, %s1433_s11  ;;  %1165 = vmatmul.msk.bf16.vlgmr.msrb.gmra.mxu3 %vm289_vm1, %v225_v21  ;;  %v313_v24 = vsel %vm289_vm1, %v254_v22, 0  ;;  %v1284_v32 = vpack.i.bf16 %v1603_v30, %v1605_v31  ;;  %v282_v10 = vpack.c.bf16 %v1605_v31, %v1605_v31 }
  0xab   :  { %322 = vmatpush.bf16.xpose.msrb.mxu0 %v313_v24 }
  0xac   :  { %v546_v12 = vsel %vm525_vm2, %v282_v10, 0 }
  0xb0   :  { %247 = vrot.lane.b32.xlu1 %v167_v14, %s1435_s4  ;;  %1275 = vrot.lane.b32.xlu0 %v1274_v25, %s1434_s21 }
  0xb2   :  { %1166 = vmatmul.msk.bf16.vlgmr.msrb.gmra.mxu0 %vm289_vm1, %v226_v26  ;;  %215 = vrot.lane.b32.xlu2 %v135_v23, %s1433_s11 }
  0xb8   :  { %221 = vrot.lane.b32.xlu0 %v135_v23, %s1435_s4  ;;  %1285 = vrot.lane.b32.xlu1 %v1284_v32, %s1434_s21 }
  0xc0   :  { %219 = vrot.lane.b32.xlu0 %v133_v13, %s1435_s4 }
  0xf9   :  { %v208_v33 = vpop.permute.xlu2 %207 }
  0xfa   :  { %v227_v60 = vpack.c.bf16 %v208_v33, %v208_v33 }
 0x104   :  { %v1281_v34 = vpop.permute.xlu2 %1280 }
 0x105   :  { %v1283_v35 = vunpack.i.h.bf16 %v1281_v34  ;;  %v1282_v43 = vunpack.i.l.bf16 %v1281_v34 }
 0x107   :  { %v258_v36 = vpack.c.bf16 %v1283_v35, %v1283_v35  ;;  %v229_v46 = vpack.c.bf16 %v1282_v43, %v1282_v43 }
 0x109   :  { %v389_v37 = vsel %vm289_vm1, %v258_v36, 0 }
 0x10a   :  { %398 = vmatpush.bf16.xpose.msra.mxu0 %v389_v37 }
 0x10c   :  { %v216_v38 = vpop.permute.xlu2 %215 }
 0x10d   :  { %v230_v39 = vpack.c.bf16 %v216_v38, %v216_v38 }
 0x111   :  { %1170 = vmatmul.msk.bf16.vlgmr.msra.gmra.mxu0 %vm289_vm1, %v230_v39 }
 0x112   :  { %v242_v40 = vpop.permute.xlu1 %241  ;;  %555 = vmatpush.bf16.msrb.mxu0 %v546_v12 }
 0x113   :  { %v257_v41 = vpack.c.bf16 %v242_v40, %v242_v40 }
 0x115   :  { %v370_v42 = vsel %vm289_vm1, %v257_v41, 0 }
 0x116   :  { %379 = vmatpush.bf16.xpose.msra.mxu3 %v370_v42 }
 0x11a   :  { %v238_v44 = vpop.permute.xlu0 %237  ;;  %v250_v45 = vpop.permute.xlu1 %249 }
 0x11b   :  { %v256_v47 = vpack.c.bf16 %v238_v44, %v238_v44  ;;  %v260_v48 = vpack.c.bf16 %v250_v45, %v250_v45 }
 0x11d   :  { %1169 = vmatmul.msk.bf16.vlgmr.msra.gmra.mxu3 %vm289_vm1, %v229_v46  ;;  %v351_v49 = vsel %vm289_vm1, %v256_v47, 0  ;;  %v427_v50 = vsel %vm289_vm1, %v260_v48, 0 }
 0x11e   :  { %360 = vmatpush.bf16.xpose.msra.mxu2 %v351_v49  ;;  %536 = vmatpush.bf16.msrb.mxu3 %v527_v11 }
 0x122   :  { %v248_v51 = vpop.permute.xlu1 %247  ;;  %v1276_v52 = vpop.permute.xlu0 %1275 }
 0x123   :  { %v1278_v53 = vunpack.i.h.bf16 %v1276_v52  ;;  %v1277_v54 = vunpack.i.l.bf16 %v1276_v52  ;;  %v259_v55 = vpack.c.bf16 %v248_v51, %v248_v51 }
 0x125   :  { %v255_v56 = vpack.c.bf16 %v1278_v53, %v1278_v53  ;;  %v228_v57 = vpack.c.bf16 %v1277_v54, %v1277_v54  ;;  %v408_v59 = vsel %vm289_vm1, %v259_v55, 0 }
 0x126   :  { %436 = vmatpush.bf16.xpose.msrb.mxu2 %v427_v50 }
 0x127   :  { %1168 = vmatmul.msk.bf16.vlgmr.msra.gmra.mxu2 %vm289_vm1, %v228_v57  ;;  %v332_v58 = vsel %vm289_vm1, %v255_v56, 0 }
 0x128   :  { %341 = vmatpush.bf16.xpose.msrb.mxu1 %v332_v58 }
 0x12a   :  { %v222_v0 = vpop.permute.xlu0 %221  ;;  %v1286_v15 = vpop.permute.xlu1 %1285 }
 0x12b   :  { %v232_v2 = vpack.c.bf16 %v222_v0, %v222_v0  ;;  %v1288_v36 = vunpack.i.h.bf16 %v1286_v15  ;;  %v1287_v37 = vunpack.i.l.bf16 %v1286_v15 }
 0x12d   :  { %v305_v61 = vpop.f32.mrf.mxu3  ;;  %v283_v38 = vpack.c.bf16 %v1288_v36, %v1288_v36  ;;  %v284_v39 = vpack.c.bf16 %v1287_v37, %v1287_v37 }
 0x12e   :  { %v442_v62 = vsel %vm289_vm1, %v305_v61, -inf }
 0x12f   :  { %v324_v63 = vpop.f32.mrf.mxu0  ;;  %1167 = vmatmul.msk.bf16.vlgmr.msrb.gmra.mxu1 %vm289_vm1, %v227_v60  ;;  %443 = vmax.xlane.f32.xlu1 %v442_v62  ;;  %v565_v45 = vsel %vm525_vm2, %v283_v38, 0  ;;  %v584_v46 = vsel %vm525_vm2, %v284_v39, 0 }
 0x130   :  { %417 = vmatpush.bf16.xpose.msra.mxu1 %v408_v59  ;;  %v445_v1 = vsel %vm289_vm1, %v324_v63, -inf  ;;  %593 = vmatpush.bf16.msra.mxu2 %v584_v46 }
 0x131   :  { %446 = vmax.xlane.f32.xlu0 %v445_v1 }
 0x132   :  { %v220_v7 = vpop.permute.xlu0 %219 }
 0x133   :  { %v231_v8 = vpack.c.bf16 %v220_v7, %v220_v7 }
 0x135   :  { %v307_v3 = vpop.f32.mrf.mxu3 }
 0x137   :  { %v326_v6 = vpop.f32.mrf.mxu0  ;;  %1172 = vmatmul.msk.bf16.vlgmr.msrb.gmra.mxu2 %vm289_vm1, %v232_v2 }
 0x138   :  { %574 = vmatpush.bf16.msrb.mxu1 %v565_v45 }
 0x13f   :  { %1171 = vmatmul.msk.bf16.vlgmr.msra.gmra.mxu1 %vm289_vm1, %v231_v8 }
 0x148   :  { %271 = vrot.lane.b32.xlu1 %v1605_v31, %s1433_s11 }
 0x150   :  { %275 = vrot.lane.b32.xlu1 %v1603_v30, %s1435_s4 }
 0x18e   :  { %v1634_v13 = vpop.f32.mrf.mxu0 }
 0x18f   :  { %v457_v43 = vsel %vm289_vm1, %v1634_v13, -inf }
 0x196   :  { %v402_v14 = vpop.f32.mrf.mxu0 }
 0x1a0   :  { %v381_v16 = vpop.f32.mrf.mxu3 }
 0x1a1   :  { %v454_v35 = vsel %vm289_vm1, %v381_v16, -inf }
 0x1a2   :  { %v444_v17 = vpop.xlane.xlu1 %443 }
 0x1a3   :  { %v466_v18 = vsub.f32 %v305_v61, %v444_v17 }
 0x1a4   :  { %v447_v19 = vpop.xlane.xlu0 %446 }
 0x1a5   :  { %v474_v20 = vmul.f32 1.442695, %v466_v18  ;;  %v467_v21 = vsub.f32 %v324_v63, %v447_v19 }
 0x1a7   :  { %1311 = vpow2.f32 %v474_v20  ;;  %v476_v22 = vmul.f32 1.442695, %v467_v21 }
 0x1a8   :  { %v383_v23 = vpop.f32.mrf.mxu3 }
 0x1a9   :  { %1313 = vpow2.f32 %v476_v22 }
 0x1aa   :  { %v1636_v24 = vpop.f32.mrf.mxu2 }
 0x1ab   :  { %v451_v52 = vsel %vm289_vm1, %v1636_v24, -inf }
 0x1ac   :  { %v343_v25 = vpop.f32.mrf.mxu1 }
 0x1ad   :  { %v1638_v26 = vpop.eup %1311  ;;  %v448_v27 = vsel %vm289_vm1, %v343_v25, -inf }
 0x1ae   :  { %v514_v28 = vpack.c.bf16 %v1638_v26, %v1638_v26  ;;  %449 = vmax.xlane.f32.xlu2 %v448_v27  ;;  %v490_v36 = vsel %vm289_vm1, %v1638_v26, 0.0 }
 0x1af   :  { %v1643_v29 = vpop.eup %1313 }
 0x1b0   :  { %v515_v32 = vpack.c.bf16 %v1643_v29, %v1643_v29  ;;  %1173 = vmatmul.msk.bf16.vlgmr.msrb.gmra.mxu3 %vm289_vm1, %v514_v28  ;;  %v493_v26 = vsel %vm289_vm1, %v1643_v29, 0.0 }
 0x1b2   :  { %v364_v33 = vpop.f32.mrf.mxu2  ;;  %1174 = vmatmul.msk.bf16.vlgmr.msrb.gmra.mxu0 %vm289_vm1, %v515_v32 }
 0x1b4   :  { %v345_v34 = vpop.f32.mrf.mxu1 }
 0x1b6   :  { %455 = vmax.xlane.f32.xlu2 %v454_v35 }
 0x1ba   :  { %v438_v40 = vpop.f32.mrf.mxu2  ;;  %v272_v44 = vpop.permute.xlu1 %271 }
 0x1bb   :  { %v286_v47 = vpack.c.bf16 %v272_v44, %v272_v44  ;;  %v463_v51 = vsel %vm289_vm1, %v438_v40, -inf }
 0x1bc   :  { %v419_v41 = vpop.f32.mrf.mxu1 }
 0x1bd   :  { %v460_v42 = vsel %vm289_vm1, %v419_v41, -inf  ;;  %v622_v48 = vsel %vm525_vm2, %v286_v47, 0 }
 0x1be   :  { %461 = vmax.xlane.f32.xlu0 %v460_v42  ;;  %458 = vmax.xlane.f32.xlu2 %v457_v43 }
 0x1bf   :  { %631 = vmatpush.bf16.msra.mxu0 %v622_v48 }
 0x1c2   :  { %v440_v49 = vpop.f32.mrf.mxu2  ;;  %v276_v53 = vpop.permute.xlu1 %275 }
 0x1c3   :  { %v287_v54 = vpack.c.bf16 %v276_v53, %v276_v53 }
 0x1c4   :  { %v421_v50 = vpop.f32.mrf.mxu1 }
 0x1c5   :  { %v641_v55 = vsel %vm525_vm2, %v287_v54, 0 }
 0x1c6   :  { %464 = vmax.xlane.f32.xlu0 %v463_v51  ;;  %452 = vmax.xlane.f32.xlu2 %v451_v52 }
 0x1c7   :  { %650 = vmatpush.bf16.msra.mxu1 %v641_v55 }
 0x1da   :  { %277 = vrot.lane.b32.xlu0 %v1605_v31, %s1435_s4 }
 0x1de   :  { %269 = vrot.lane.b32.xlu2 %v1603_v30, %s1433_s11 }
 0x221   :  { %v450_v56 = vpop.xlane.xlu2 %449 }
 0x222   :  { %v468_v57 = vsub.f32 %v343_v25, %v450_v56 }
 0x224   :  { %v478_v58 = vmul.f32 1.442695, %v468_v57 }
 0x226   :  { %1315 = vpow2.f32 %v478_v58 }
 0x229   :  { %v456_v59 = vpop.xlane.xlu2 %455 }
 0x22a   :  { %v470_v60 = vsub.f32 %v381_v16, %v456_v59 }
 0x22c   :  { %v1316_v61 = vpop.eup %1315  ;;  %v482_v62 = vmul.f32 1.442695, %v470_v60 }
 0x22d   :  { %v516_v63 = vpack.c.bf16 %v1316_v61, %v1316_v61  ;;  %v496_v0 = vsel %vm289_vm1, %v1316_v61, 0.0 }
 0x22e   :  { %1317 = vpow2.f32 %v482_v62  ;;  %497 = vadd.xlane.f32.xlu1 %v496_v0 }
 0x22f   :  { %v1665_v1 = vpop.f32.mrf.mxu0  ;;  %1175 = vmatmul.msk.bf16.vlgmr.msrb.gmra.mxu1 %vm289_vm1, %v516_v63 }
 0x231   :  { %v462_v31 = vpop.xlane.xlu0 %461  ;;  %v459_v2 = vpop.xlane.xlu2 %458 }
 0x232   :  { %v472_v30 = vsub.f32 %v419_v41, %v462_v31  ;;  %v471_v3 = vsub.f32 %v1634_v13, %v459_v2 }
 0x233   :  { %v1669_v6 = vpop.f32.mrf.mxu3 }
 0x234   :  { %v1318_v7 = vpop.eup %1317  ;;  %v486_v8 = vmul.f32 1.442695, %v472_v30  ;;  %v484_v9 = vmul.f32 1.442695, %v471_v3 }
 0x235   :  { %v502_v10 = vsel %vm289_vm1, %v1318_v7, 0.0  ;;  %v518_v34 = vpack.c.bf16 %v1318_v7, %v1318_v7 }
 0x236   :  { %1319 = vpow2.f32 %v486_v8  ;;  %503 = vadd.xlane.f32.xlu2 %v502_v10 }
 0x237   :  { %1321 = vpow2.f32 %v484_v9  ;;  %v559_v11 = vpop.f32.mrf.mxu0 }
 0x239   :  { %v465_v12 = vpop.xlane.xlu0 %464  ;;  %v453_v14 = vpop.xlane.xlu2 %452 }
 0x23a   :  { %v473_v15 = vsub.f32 %v438_v40, %v465_v12  ;;  %v469_v16 = vsub.f32 %v1636_v24, %v453_v14  ;;  %v1249_v14 = vld [vmem:[%s1799_s7 + $0x8] sm:$0xff] }
 0x23b   :  { %v540_v17 = vpop.f32.mrf.mxu3 }
 0x23c   :  { %v1320_v18 = vpop.eup %1319  ;;  %v488_v19 = vmul.f32 1.442695, %v473_v15  ;;  %v480_v13 = vmul.f32 1.442695, %v469_v16  ;;  %v1248_v15 = vld [vmem:[%s1799_s7] sm:$0xff] }
 0x23d   :  { %v1322_v20 = vpop.eup %1321  ;;  %v520_v21 = vpack.c.bf16 %v1320_v18, %v1320_v18  ;;  %v508_v40 = vsel %vm289_vm1, %v1320_v18, 0.0 }
 0x23e   :  { %v519_v22 = vpack.c.bf16 %v1322_v20, %v1322_v20  ;;  %1323 = vpow2.f32 %v488_v19  ;;  %v505_v23 = vsel %vm289_vm1, %v1322_v20, 0.0 }
 0x23f   :  { %1325 = vpow2.f32 %v480_v13  ;;  %506 = vadd.xlane.f32.xlu1 %v505_v23  ;;  %1179 = vmatmul.msk.bf16.vlgmr.msra.gmra.mxu1 %vm289_vm1, %v520_v21 }
 0x240   :  { %1178 = vmatmul.msk.bf16.vlgmr.msra.gmra.mxu0 %vm289_vm1, %v519_v22 }
 0x241   :  { %v270_v25 = vpop.permute.xlu2 %269 }
 0x242   :  { %v285_v27 = vpack.c.bf16 %v270_v25, %v270_v25 }
 0x244   :  { %v1324_v28 = vpop.eup %1323  ;;  %v603_v24 = vsel %vm525_vm2, %v285_v27, 0 }
 0x245   :  { %v1326_v32 = vpop.eup %1325  ;;  %612 = vmatpush.bf16.msra.mxu3 %v603_v24  ;;  %v511_v33 = vsel %vm289_vm1, %v1324_v28, 0.0  ;;  %v521_v42 = vpack.c.bf16 %v1324_v28, %v1324_v28 }
 0x246   :  { %v517_v35 = vpack.c.bf16 %v1326_v32, %v1326_v32  ;;  %512 = vadd.xlane.f32.xlu2 %v511_v33  ;;  %v499_v37 = vsel %vm289_vm1, %v1326_v32, 0.0 }
 0x247   :  { %491 = vadd.xlane.f32.xlu1 %v490_v36  ;;  %500 = vadd.xlane.f32.xlu0 %v499_v37 }
 0x248   :  { %1176 = vmatmul.msk.bf16.vlgmr.msra.gmra.mxu2 %vm289_vm1, %v517_v35  ;;  %1177 = vmatmul.msk.bf16.vlgmr.msra.gmra.mxu3 %vm289_vm1, %v518_v34 }
 0x249   :  { %753 = vmatpush.bf16.msrb.mxu3 %v1249_v14 }
 0x24c   :  { %v278_v38 = vpop.permute.xlu0 %277 }
 0x24d   :  { %v288_v39 = vpack.c.bf16 %v278_v38, %v278_v38  ;;  %754 = vmatpush.bf16.msrb.mxu3 %v1248_v15  ;;  %v1252_v15 = vld [vmem:[#allocation5] sm:$0xff] }
 0x24f   :  { %v660_v41 = vsel %vm525_vm2, %v288_v39, 0  ;;  %509 = vadd.xlane.f32.xlu0 %v508_v40 }
 0x250   :  { %669 = vmatpush.bf16.msrb.mxu2 %v660_v41  ;;  %v1251_v41 = vld [vmem:[#allocation2 + $0x8] sm:$0xff] }
 0x251   :  { %791 = vmatpush.bf16.msrb.mxu0 %v1251_v41 }
 0x257   :  { %494 = vadd.xlane.f32.xlu0 %v493_v26 }
 0x258   :  { %1180 = vmatmul.msk.bf16.vlgmr.msrb.gmra.mxu2 %vm289_vm1, %v521_v42  ;;  %v1307_v42 = vld [vmem:[%s1800_s8] ss:$0 sm:$0xff] }
 0x2a1   :  { %v498_v45 = vpop.xlane.xlu1 %497 }
 0x2a2   :  { %1327 = vrcp.f32 %v498_v45 }
 0x2a8   :  { %v1328_v53 = vpop.eup %1327 }
 0x2a9   :  { %v504_v48 = vpop.xlane.xlu2 %503 }
 0x2aa   :  { %1329 = vrcp.f32 %v504_v48 }
 0x2ac   :  { %v576_v43 = vpop.f32.mrf.mxu1 }
 0x2ad   :  { %v685_v58 = vmul.f32 %v1328_v53, %v576_v43 }
 0x2b0   :  { %v1330_v54 = vpop.eup %1329 }
 0x2b2   :  { %v507_v49 = vpop.xlane.xlu1 %506 }
 0x2b3   :  { %1331 = vrcp.f32 %v507_v49 }
 0x2b4   :  { %v578_v44 = vpop.f32.mrf.mxu1 }
 0x2b9   :  { %v1332_v29 = vpop.eup %1331  ;;  %v513_v31 = vpop.xlane.xlu2 %512 }
 0x2ba   :  { %v501_v50 = vpop.xlane.xlu0 %500  ;;  %v492_v16 = vpop.xlane.xlu1 %491 }
 0x2bb   :  { %1333 = vrcp.f32 %v501_v50 }
 0x2bc   :  { %v652_v46 = vpop.f32.mrf.mxu1 }
 0x2bd   :  { %v633_v47 = vpop.f32.mrf.mxu0 }
 0x2be   :  { %v688_v59 = vmul.f32 %v1332_v29, %v633_v47 }
 0x2c1   :  { %v1334_v55 = vpop.eup %1333 }
 0x2c2   :  { %v510_v0 = vpop.xlane.xlu0 %509 }
 0x2c3   :  { %1335 = vrcp.f32 %v510_v0 }
 0x2c4   :  { %v654_v51 = vpop.f32.mrf.mxu1  ;;  %1337 = vrcp.f32 %v513_v31 }
 0x2c5   :  { %v635_v52 = vpop.f32.mrf.mxu0  ;;  %1339 = vrcp.f32 %v492_v16 }
 0x2c9   :  { %v1336_v3 = vpop.eup %1335 }
 0x2ca   :  { %v1338_v7 = vpop.eup %1337  ;;  %v689_v9 = vmul.f32 %v1336_v3, %v652_v46  ;;  %v495_v17 = vpop.xlane.xlu0 %494  ;;  %v1308_v46 = vld [vmem:[%s1802_s10] ss:$0 sm:$0xff]  ;;  %s1439_s10 = smov [#allocation7]  }
 0x2cb   :  { %v595_v56 = vpop.f32.mrf.mxu2  ;;  %v614_v57 = vpop.f32.mrf.mxu3  ;;  %1341 = vrcp.f32 %v495_v17  ;;  %s1122_s28 = sshll.u32 %s1439_s10, 4  ;;  %s1123_s28 = int_to_ptr.vmem [resolvable:$true] %s1122_s28 }
 0x2cc   :  { %v686_v60 = vmul.f32 %v1334_v55, %v595_v56  ;;  %v687_v61 = vmul.f32 %v1330_v54, %v614_v57  ;;  %v1340_v19 = vpop.eup %1339 }
 0x2cd   :  { %v683_v27 = vmul.f32 %v1340_v19, %v1669_v6  ;;  %v1250_v6 = vld [vmem:[#allocation2] sm:$0xff] }
 0x2ce   :  { %v1289_v62 = vpack.i.bf16 %v686_v60, %v685_v58  ;;  %v1294_v63 = vpack.i.bf16 %v688_v59, %v687_v61  ;;  %792 = vmatpush.bf16.msrb.mxu0 %v1250_v6 }
 0x2d0   :  { %1290 = vrot.lane.b32.xlu2 %v1289_v62, %s1436_s6  ;;  %1295 = vrot.lane.b32.xlu1 %v1294_v63, %s1437_s22 }
 0x2d1   :  { %v1342_v20 = vpop.eup %1341 }
 0x2d2   :  { %v684_v28 = vmul.f32 %v1342_v20, %v1665_v1 }
 0x2d3   :  { %v597_v2 = vpop.f32.mrf.mxu2  ;;  %v616_v30 = vpop.f32.mrf.mxu3 }
 0x2db   :  { %v671_v8 = vpop.f32.mrf.mxu2 }
 0x2dc   :  { %v690_v10 = vmul.f32 %v1338_v7, %v671_v8 }
 0x2de   :  { %v1299_v11 = vpack.i.bf16 %v690_v10, %v689_v9  ;;  %v1253_v9 = vld [vmem:[#allocation5 + $0x8] sm:$0xff] }
 0x2df   :  { %883 = vmatpush.bf16.msrb.mxu1 %v1253_v9 }
 0x2e0   :  { %1300 = vrot.lane.b32.xlu0 %v1299_v11, %s1438_s2 }
 0x2e3   :  { %v673_v12 = vpop.f32.mrf.mxu2  ;;  %884 = vmatpush.bf16.msrb.mxu1 %v1252_v15 }
 0x32a   :  { %v1291_v18 = vpop.permute.xlu2 %1290 }
 0x32b   :  { %v1293_v21 = vunpack.i.h.bf16 %v1291_v18  ;;  %v1292_v22 = vunpack.i.l.bf16 %v1291_v18 }
 0x32d   :  { %v716_v32 = vsel %vm289_vm1, %v684_v28, %v1293_v21  ;;  %v715_v33 = vsel %vm289_vm1, %v683_v27, %v1292_v22  ;;  %v803_v22 = vld [vmem:[%s1807_s15] sm:$0x1] }
 0x32e   :  { %v804_v28 = vld [vmem:[%s1808_s16] sm:$0x1] }
 0x342   :  { %v1296_v13 = vpop.permute.xlu1 %1295 }
 0x343   :  { %v1298_v23 = vunpack.i.h.bf16 %v1296_v13  ;;  %v1297_v25 = vunpack.i.l.bf16 %v1296_v13 }
 0x345   :  { %v719_v36 = vsel %vm717_vm3, %v716_v32, %v1298_v23  ;;  %v718_v37 = vsel %vm717_vm3, %v715_v33, %v1297_v25 }
 0x352   :  { %v1301_v24 = vpop.permute.xlu0 %1300 }
 0x353   :  { %v1303_v34 = vunpack.i.h.bf16 %v1301_v24  ;;  %v1302_v35 = vunpack.i.l.bf16 %v1301_v24 }
 0x355   :  { %v721_v38 = vsel %vm720_vm4, %v718_v37, %v1302_v35  ;;  %v722_v39 = vsel %vm720_vm4, %v719_v36, %v1303_v34 }
 0x356   :  { %v723_v40 = vpack.c.bf16 %v722_v39, %v721_v38 }
 0x358   :  { %1189 = vmatmul.msk.bf16.vlgmr.msrb.gmra.mxu3 %vm119_vm0, %v723_v40  ;;  %v1309_v40 = vld [vmem:[%s1804_s12] ss:$0 sm:$0xff] }
 0x3db   :  { %v756_v1 = vpop.f32.mrf.mxu3 }
 0x3dc   :  { %v757_v43 = vadd.f32 %v1307_v42, %v756_v1  ;;  %v1261_v1 = vld [vmem:[%s1805_s13 + $0x38] sm:$0xff] }
 0x3dd   :  { %1048 = vmatpush.bf16.msra.mxu2 %v1261_v1 }
 0x3e3   :  { %v758_v26 = vpop.f32.mrf.mxu3 }
 0x3e4   :  { %v759_v44 = vadd.f32 %v1307_v42, %v758_v26 }
 0x3e6   :  { %v761_v45 = vpack.c.bf16 %v759_v44, %v757_v43  ;;  %v1260_v43 = vld [vmem:[%s1805_s13 + $0x30] sm:$0xff] }
 0x3e7   :  { %1049 = vmatpush.bf16.msra.mxu2 %v1260_v43 }
 0x3e8   :  { %1198 = vmatmul.msk.bf16.vlgmr.msrb.gmra.mxu0 %vm119_vm0, %v761_v45 }
 0x465   :  { %v794_v47 = vpop.f32.mrf.mxu0 }
 0x466   :  { %v795_v48 = vadd.f32 %v1308_v46, %v794_v47 }
 0x468   :  { %v799_v49 = vadd.f32 %v795_v48, %v1562_v4 }
 0x46a   :  { %v801_v51 = vmul.f32 0.7072136, %v799_v49  ;;  %v1259_v49 = vld [vmem:[%s1805_s13 + $0x28] sm:$0xff] }
 0x46b   :  { %1050 = vmatpush.bf16.msra.mxu2 %v1259_v49 }
 0x46c   :  { %v815_v54 = vmul.f32 %v801_v51, %v801_v51  ;;  %v805_v55 = vsel %vm119_vm0, %v801_v51, 0.0 }
 0x46d   :  { %v796_v50 = vpop.f32.mrf.mxu0 }
 0x46e   :  { %v797_v52 = vadd.f32 %v1308_v46, %v796_v50  ;;  %v817_v59 = vsel %vm119_vm0, %v815_v54, 0.0  ;;  %v1258_v54 = vld [vmem:[%s1805_s13 + $0x20] sm:$0xff] }
 0x46f   :  { %1051 = vmatpush.bf16.msra.mxu2 %v1258_v54 }
 0x470   :  { %v800_v53 = vadd.f32 %v797_v52, %v1567_v5 }
 0x472   :  { %v802_v29 = vmul.f32 0.7072136, %v800_v53 }
 0x474   :  { %v806_v56 = vsel %vm119_vm0, %v802_v29, 0.0  ;;  %v816_v57 = vmul.f32 %v802_v29, %v802_v29 }
 0x475   :  { %v807_v58 = vadd.f32 %v806_v56, %v805_v55 }
 0x476   :  { %v818_v60 = vsel %vm119_vm0, %v816_v57, 0.0 }
 0x477   :  { %v808_v61 = vrot.slane %v807_v58, 4  ;;  %v819_v62 = vadd.f32 %v818_v60, %v817_v59  ;;  %v1257_v59 = vld [vmem:[%s1805_s13 + $0x18] sm:$0xff] }
 0x478   :  { %1052 = vmatpush.bf16.msra.mxu2 %v1257_v59 }
 0x479   :  { %v809_v4 = vadd.f32 %v808_v61, %v807_v58  ;;  %v820_v63 = vrot.slane %v819_v62, 4 }
 0x47b   :  { %v810_v0 = vrot.slane %v809_v4, 2  ;;  %v821_v31 = vadd.f32 %v820_v63, %v819_v62 }
 0x47d   :  { %v811_v2 = vadd.f32 %v810_v0, %v809_v4  ;;  %v822_v5 = vrot.slane %v821_v31, 2 }
 0x47f   :  { %v812_v30 = vrot.slane %v811_v2, 1  ;;  %v823_v3 = vadd.f32 %v822_v5, %v821_v31 }
 0x481   :  { %v813_v7 = vadd.f32 %v812_v30, %v811_v2  ;;  %v824_v8 = vrot.slane %v823_v3, 1  ;;  %v1256_v2 = vld [vmem:[%s1805_s13 + $0x10] sm:$0xff] }
 0x482   :  { %1053 = vmatpush.bf16.msra.mxu2 %v1256_v2 }
 0x483   :  { %v814_v10 = vmul.f32 0.0625, %v813_v7  ;;  %v825_v11 = vadd.f32 %v824_v8, %v823_v3 }
 0x485   :  { %v826_v12 = vmul.f32 0.0625, %v825_v11  ;;  %v827_v14 = vmul.f32 %v814_v10, %v814_v10  ;;  %v1255_v11 = vld [vmem:[%s1805_s13 + $0x8] sm:$0xff] }
 0x486   :  { %1054 = vmatpush.bf16.msra.mxu2 %v1255_v11 }
 0x487   :  { %v828_v16 = vsub.f32 %v826_v12, %v827_v14 }
 0x489   :  { %v829_v17 = vadd.f32 1e-05, %v828_v16 }
 0x48b   :  { %1343 = vrsqrt.f32 %v829_v17  ;;  %vm836_vm6 = vweird.f32 %v829_v17 }
 0x491   :  { %v1344_v18 = vpop.eup %1343 }
 0x492   :  { %v831_v19 = vmul.f32 %v1344_v18, %v829_v17  ;;  %vm837_vm5 = vweird.f32 %v1344_v18 }
 0x493   :  { %vm838_vm7 = vmor %vm836_vm6, %vm837_vm5 }
 0x494   :  { %v832_v13 = vmul.f32 %v1344_v18, %v831_v19 }
 0x496   :  { %v833_v20 = vmul.f32 0.5, %v832_v13 }
 0x498   :  { %v834_v21 = vsub.f32 1.5, %v833_v20 }
 0x49a   :  { %v835_v23 = vmul.f32 %v1344_v18, %v834_v21 }
 0x49c   :  { %v839_v25 = vsel %vm838_vm7, %v1344_v18, %v835_v23  ;;  %v1254_v18 = vld [vmem:[%s1805_s13] sm:$0xff] }
 0x49d   :  { %v840_v27 = vmul.f32 %v839_v25, %v803_v22  ;;  %1055 = vmatpush.bf16.msra.mxu2 %v1254_v18 }
 0x49f   :  { %v842_v24 = vperm.slane %v840_v27, 0  ;;  %v846_v32 = vmul.f32 %v840_v27, %v814_v10 }
 0x4a1   :  { %v847_v33 = vsub.f32 %v804_v28, %v846_v32  ;;  %v844_v34 = vmul.f32 %v842_v24, %v801_v51  ;;  %v845_v35 = vmul.f32 %v842_v24, %v802_v29 }
 0x4a3   :  { %v849_v36 = vperm.slane %v847_v33, 0 }
 0x4a5   :  { %v1719_v37 = vadd.f32 %v849_v36, %v844_v34  ;;  %v1721_v38 = vadd.f32 %v849_v36, %v845_v35 }
 0x4a7   :  { %v853_v39 = vpack.c.bf16 %v1721_v38, %v1719_v37 }
 0x4a9   :  { %1207 = vmatmul.msk.bf16.vlgmr.msrb.gmra.mxu1 %vm119_vm0, %v853_v39 }
 0x526   :  { %v886_v41 = vpop.f32.mrf.mxu1 }
 0x527   :  { %v1729_v6 = vadd.f32 %v1309_v40, %v886_v41 }
 0x529   :  { %v1735_v42 = vmul.f32 0.70710677, %v1729_v6 }
 0x52b   :  { %v895_v26 = vmul.f32 %v1735_v42, %v1735_v42 }
 0x52d   :  { %v896_v44 = vmin.f32 %v895_v26, 16.0 }
 0x52e   :  { %v888_v45 = vpop.f32.mrf.mxu1 }
 0x52f   :  { %v897_v46 = vmul.f32 2.1237322e-06, %v896_v44  ;;  %v908_v47 = vmul.f32 3.8918573e-05, %v896_v44  ;;  %v1742_v48 = vadd.f32 %v1309_v40, %v888_v45 }
 0x531   :  { %v898_v50 = vadd.f32 0.00028619796, %v897_v46  ;;  %v909_v51 = vadd.f32 0.001143296, %v908_v47  ;;  %v1748_v52 = vmul.f32 0.70710677, %v1742_v48 }
 0x533   :  { %v910_v53 = vmul.f32 %v909_v51, %v896_v44  ;;  %v935_v29 = vmul.f32 %v1748_v52, %v1748_v52  ;;  %v899_v55 = vmul.f32 %v898_v50, %v896_v44 }
 0x535   :  { %v911_v56 = vadd.f32 0.014752088, %v910_v53  ;;  %v936_v57 = vmin.f32 %v935_v29, 16.0  ;;  %v900_v62 = vadd.f32 0.0036580483, %v899_v55 }
 0x537   :  { %v912_v58 = vmul.f32 %v911_v56, %v896_v44  ;;  %v937_v60 = vmul.f32 2.1237322e-06, %v936_v57  ;;  %v948_v61 = vmul.f32 3.8918573e-05, %v936_v57  ;;  %v901_v3 = vmul.f32 %v900_v62, %v896_v44 }
 0x539   :  { %v913_v4 = vadd.f32 0.112945676, %v912_v58  ;;  %v938_v63 = vadd.f32 0.00028619796, %v937_v60  ;;  %v949_v0 = vadd.f32 0.001143296, %v948_v61 }
 0x53a   :  { %v902_v14 = vadd.f32 0.05243302, %v901_v3 }
 0x53b   :  { %v914_v31 = vmul.f32 %v913_v4, %v896_v44  ;;  %v939_v5 = vmul.f32 %v938_v63, %v936_v57  ;;  %v950_v30 = vmul.f32 %v949_v0, %v936_v57  ;;  %v891_v4 = vmul.f32 0.5, %v1729_v6 }
 0x53c   :  { %v903_v13 = vmul.f32 %v902_v14, %v896_v44  ;;  %v892_v63 = vmul.f32 0.5, %v1742_v48 }
 0x53d   :  { %v915_v7 = vadd.f32 0.4994258, %v914_v31  ;;  %v940_v8 = vadd.f32 0.0036580483, %v939_v5  ;;  %v951_v9 = vadd.f32 0.014752088, %v950_v30 }
 0x53e   :  { %v904_v25 = vadd.f32 0.18741608, %v903_v13  ;;  %v1310_v30 = vld [vmem:[%s1806_s14] ss:$0 sm:$0xff] }
 0x53f   :  { %v916_v10 = vmul.f32 %v915_v7, %v896_v44  ;;  %v952_v12 = vmul.f32 %v951_v9, %v936_v57  ;;  %v941_v16 = vmul.f32 %v940_v8, %v936_v57 }
 0x540   :  { %v905_v33 = vmul.f32 %v904_v25, %v896_v44 }
 0x541   :  { %v917_v15 = vadd.f32 1.0, %v916_v10  ;;  %v953_v17 = vadd.f32 0.112945676, %v952_v12  ;;  %v942_v20 = vadd.f32 0.05243302, %v941_v16 }
 0x542   :  { %v906_v41 = vadd.f32 1.1283791, %v905_v33 }
 0x543   :  { %1345 = vrcp.f32 %v917_v15  ;;  %v954_v19 = vmul.f32 %v953_v17, %v936_v57  ;;  %v943_v28 = vmul.f32 %v942_v20, %v936_v57  ;;  %v929_v35 = vand.u32 2147483648, %v917_v15 }
 0x544   :  { %v927_v39 = vand.u32 2147483647, %v917_v15  ;;  %vm923_vm9 = vweird.f32 %v917_v15  ;;  %v907_v49 = vmul.f32 %v906_v41, %v1735_v42 }
 0x545   :  { %v955_v21 = vadd.f32 0.4994258, %v954_v19  ;;  %v944_v36 = vadd.f32 0.18741608, %v943_v28  ;;  %v930_v43 = vor.u32 1.1754944e-38, %v929_v35 }
 0x546   :  { %vm928_vm11 = vcmp.eq.f32.partialorder %v927_v39, 8.507059e+37 }
 0x547   :  { %v956_v22 = vmul.f32 %v955_v21, %v936_v57  ;;  %v945_v45 = vmul.f32 %v944_v36, %v936_v57 }
 0x549   :  { %v1346_v23 = vpop.eup %1345  ;;  %v957_v24 = vadd.f32 1.0, %v956_v22  ;;  %v946_v44 = vadd.f32 1.1283791, %v945_v45  ;;  %v1066_v45 = vld [vmem:[%s1809_s17] sm:$0x1]  ;;  %s1124_s17 = sshll.u32 %s1811_s19, 4  ;;  %s1125_s17 = int_to_ptr.hbm [resolvable:$true] %s1124_s17 }
 0x54a   :  { %v919_v27 = vmul.f32 %v1346_v23, %v917_v15  ;;  %vm924_vm8 = vweird.f32 %v1346_v23 }
 0x54b   :  { %1347 = vrcp.f32 %v957_v24  ;;  %vm925_vm10 = vmor %vm923_vm9, %vm924_vm8  ;;  %v969_v51 = vand.u32 2147483648, %v957_v24  ;;  %v967_v29 = vand.u32 2147483647, %v957_v24  ;;  %vm963_vm13 = vweird.f32 %v957_v24 }
 0x54c   :  { %v920_v32 = vsub.f32 1.0, %v919_v27  ;;  %v947_v59 = vmul.f32 %v946_v44, %v1748_v52 }
 0x54d   :  { %v970_v56 = vor.u32 1.1754944e-38, %v969_v51  ;;  %vm968_vm15 = vcmp.eq.f32.partialorder %v967_v29, 8.507059e+37 }
 0x54e   :  { %v921_v34 = vmul.f32 %v1346_v23, %v920_v32 }
 0x550   :  { %v922_v40 = vadd.f32 %v1346_v23, %v921_v34 }
 0x551   :  { %v1348_v1 = vpop.eup %1347 }
 0x552   :  { %v926_v26 = vsel %vm925_vm10, %v1346_v23, %v922_v40  ;;  %v959_v46 = vmul.f32 %v1348_v1, %v957_v24  ;;  %vm964_vm12 = vweird.f32 %v1348_v1 }
 0x553   :  { %v931_v47 = vsel %vm928_vm11, %v930_v43, %v926_v26  ;;  %vm965_vm14 = vmor %vm963_vm13, %vm964_vm12 }
 0x554   :  { %v960_v50 = vsub.f32 1.0, %v959_v46  ;;  %v932_v53 = vmul.f32 %v931_v47, %v907_v49 }
 0x556   :  { %v961_v54 = vmul.f32 %v1348_v1, %v960_v50  ;;  %v1208_v58 = vclamps-f32 %v932_v53, 1.0  ;;  %v1067_v50 = vld [vmem:[%s1810_s18] sm:$0x1]  ;;  %s1440_s18 = smov 128  }
 0x558   :  { %v962_v55 = vadd.f32 %v1348_v1, %v961_v54  ;;  %v975_v62 = vadd.f32 1.0, %v1208_v58 }
 0x55a   :  { %v966_v57 = vsel %vm965_vm14, %v1348_v1, %v962_v55  ;;  %v977_v31 = vmul.f32 %v975_v62, %v891_v4 }
 0x55b   :  { %v971_v60 = vsel %vm968_vm15, %v970_v56, %v966_v57 }
 0x55c   :  { %v972_v61 = vmul.f32 %v971_v60, %v947_v59 }
 0x55e   :  { %v1209_v42 = vclamps-f32 %v972_v61, 1.0 }
 0x560   :  { %v976_v0 = vadd.f32 1.0, %v1209_v42 }
 0x562   :  { %v978_v2 = vmul.f32 %v976_v0, %v892_v63 }
 0x564   :  { %v979_v5 = vpack.c.bf16 %v978_v2, %v977_v31 }
 0x566   :  { %1056 = vmatmul.bf16.vlgmr.msra.gmra.mxu2 %v979_v5 }
 0x5e9   :  { %v1057_v52 = vpop.f32.mrf.mxu2 }
 0x5ea   :  { %v1058_v3 = vadd.f32 %v1310_v30, %v1057_v52 }
 0x5ec   :  { %v1062_v7 = vadd.f32 %v1058_v3, %v1719_v37 }
 0x5ee   :  { %v1064_v9 = vmul.f32 0.7072136, %v1062_v7 }
 0x5f0   :  { %v1078_v11 = vmul.f32 %v1064_v9, %v1064_v9  ;;  %v1068_v12 = vsel %vm119_vm0, %v1064_v9, 0.0 }
 0x5f1   :  { %v1059_v8 = vpop.f32.mrf.mxu2 }
 0x5f2   :  { %v1060_v10 = vadd.f32 %v1310_v30, %v1059_v8  ;;  %v1080_v17 = vsel %vm119_vm0, %v1078_v11, 0.0 }
 0x5f4   :  { %v1063_v6 = vadd.f32 %v1060_v10, %v1721_v38 }
 0x5f6   :  { %v1065_v48 = vmul.f32 0.7072136, %v1063_v6 }
 0x5f8   :  { %v1069_v14 = vsel %vm119_vm0, %v1065_v48, 0.0  ;;  %v1079_v15 = vmul.f32 %v1065_v48, %v1065_v48 }
 0x5f9   :  { %v1070_v16 = vadd.f32 %v1069_v14, %v1068_v12 }
 0x5fa   :  { %v1081_v18 = vsel %vm119_vm0, %v1079_v15, 0.0 }
 0x5fb   :  { %v1071_v19 = vrot.slane %v1070_v16, 4  ;;  %v1082_v13 = vadd.f32 %v1081_v18, %v1080_v17 }
 0x5fd   :  { %v1072_v37 = vadd.f32 %v1071_v19, %v1070_v16  ;;  %v1083_v20 = vrot.slane %v1082_v13, 4 }
 0x5ff   :  { %v1073_v21 = vrot.slane %v1072_v37, 2  ;;  %v1084_v22 = vadd.f32 %v1083_v20, %v1082_v13 }
 0x601   :  { %v1074_v23 = vadd.f32 %v1073_v21, %v1072_v37  ;;  %v1085_v38 = vrot.slane %v1084_v22, 2 }
 0x603   :  { %v1075_v25 = vrot.slane %v1074_v23, 1  ;;  %v1086_v27 = vadd.f32 %v1085_v38, %v1084_v22 }
 0x605   :  { %v1076_v28 = vadd.f32 %v1075_v25, %v1074_v23  ;;  %v1087_v24 = vrot.slane %v1086_v27, 1 }
 0x607   :  { %v1077_v32 = vmul.f32 0.0625, %v1076_v28  ;;  %v1088_v33 = vadd.f32 %v1087_v24, %v1086_v27 }
 0x609   :  { %v1089_v34 = vmul.f32 0.0625, %v1088_v33  ;;  %v1090_v35 = vmul.f32 %v1077_v32, %v1077_v32 }
 0x60b   :  { %v1091_v36 = vsub.f32 %v1089_v34, %v1090_v35 }
 0x60d   :  { %v1092_v39 = vadd.f32 1e-05, %v1091_v36 }
 0x60f   :  { %1349 = vrsqrt.f32 %v1092_v39  ;;  %vm1099_vm2 = vweird.f32 %v1092_v39 }
 0x615   :  { %v1350_v40 = vpop.eup %1349 }
 0x616   :  { %v1094_v41 = vmul.f32 %v1350_v40, %v1092_v39  ;;  %vm1100_vm1 = vweird.f32 %v1350_v40 }
 0x617   :  { %vm1101_vm3 = vmor %vm1099_vm2, %vm1100_vm1 }
 0x618   :  { %v1095_v1 = vmul.f32 %v1350_v40, %v1094_v41 }
 0x61a   :  { %v1096_v26 = vmul.f32 0.5, %v1095_v1 }
 0x61c   :  { %v1097_v43 = vsub.f32 1.5, %v1096_v26 }
 0x61e   :  { %v1098_v46 = vmul.f32 %v1350_v40, %v1097_v43 }
 0x620   :  { %v1102_v47 = vsel %vm1101_vm3, %v1350_v40, %v1098_v46 }
 0x621   :  { %v1103_v49 = vmul.f32 %v1102_v47, %v1066_v45 }
 0x623   :  { %v1105_v44 = vperm.slane %v1103_v49, 0  ;;  %v1109_v51 = vmul.f32 %v1103_v49, %v1077_v32 }
 0x625   :  { %v1110_v53 = vsub.f32 %v1067_v50, %v1109_v51  ;;  %v1107_v54 = vmul.f32 %v1105_v44, %v1064_v9  ;;  %v1108_v29 = vmul.f32 %v1105_v44, %v1065_v48 }
 0x627   :  { %v1112_v55 = vperm.slane %v1110_v53, 0 }
 0x629   :  { %v1114_v56 = vadd.f32 %v1112_v55, %v1107_v54  ;;  %v1115_v58 = vadd.f32 %v1112_v55, %v1108_v29 }
 0x62b   :  { %1116 = vst.msk [vmem:[#allocation7] sm:$0xff] %vm119_vm0, %v1114_v56 }
 0x62c   :  { %1117 = vst.msk [vmem:[#allocation7 + $0x8] sm:$0xff] %vm119_vm0, %v1115_v58 }
 0x62d   :  { %1130 = dma.vmem_to_hbm [thread:$0]  %s1123_s28, 256, %s1125_s17, [#allocation4], %s1440_s18, %s1440_s18, %s1436_s6  }
 0x62e   :  { %1427 = dma.done.wait [#allocation4], 256  }
 0x62f   :  { %1428 = vsyncadd [#allocation4], 4294967040 }
 0x630   :  { %1135 = vsyncpa [#allocation3], 1 }
 0x631   :  { %1136 = vsyncpa [#allocation6], 1 }
 0x632   :  { %1137 = vsyncpa [#allocation4], 1 }

</bundles_post_ra>
